<compile_context>
chip_gen: v7x
topology: tpu7x:2x2x1
jax: 0.10.0
libtpu: 0.0.40
codegen_flags: <defaults>
</compile_context>

<pallas_src>
import jax
import jax.numpy as jnp
import numpy as np
from jax.experimental import pallas as pl
from jax.experimental.pallas import tpu as pltpu

NEG_SLOPE = 0.01            # PyTorch nn.LeakyReLU default
IN_FEATURES = 251
TILE_B_MAX = 4096           # ~4 MiB f32 x tile (251 lanes pad to 256 in VMEM), 2x-buffered
SPLIT_THRESHOLD = 256       # once B >= this, force >= 2 grid steps (v7x megacore)
VMEM_LIMIT_BYTES = 48 * 1024 * 1024


def _ceil_to(n, m):
    return ((n + m - 1) // m) * m


def _leaky_relu(x):
    return jnp.where(x > 0, x, NEG_SLOPE * x)


def _choose_tile_b(B):
    """Pick a batch tile with no wrapper-side padding.

    - enough steps so tiles never exceed TILE_B_MAX,
    - >= 2 steps for megacore once the batch is non-trivial,
    - tile is a multiple of 8 sublanes, or equal to the full batch dim (always legal).
    """
    n_steps = max(1, -(-B // TILE_B_MAX))
    if B >= SPLIT_THRESHOLD:
        n_steps = max(n_steps, 2)
    tile_b = _ceil_to(-(-B // n_steps), 8)
    if tile_b >= B:
        tile_b = B          # block dim == full array dim: legal regardless of 8-divisibility
    return tile_b


def mlp_kernel(x_ref, w1_ref, b1_ref, w2_ref, b2_ref, w3_ref, b3_ref, o_ref):
    """One batch tile: (tile_b, 251) -> (tile_b, 2). bf16 MXU operands, f32 accumulation."""
    x = x_ref[...].astype(jnp.bfloat16)                                 # (tile_b, 251)

    h1 = jnp.dot(x, w1_ref[...], preferred_element_type=jnp.float32) + b1_ref[...]
    h1 = _leaky_relu(h1)                                                # (tile_b, 64) f32

    h2 = jnp.dot(h1.astype(jnp.bfloat16), w2_ref[...],
                 preferred_element_type=jnp.float32) + b2_ref[...]
    h2 = _leaky_relu(h2)                                                # (tile_b, 16) f32

    out = jnp.dot(h2.astype(jnp.bfloat16), w3_ref[...],
                  preferred_element_type=jnp.float32) + b3_ref[...]
    o_ref[...] = out.astype(o_ref.dtype)                                # (tile_b, 2)


@jax.jit
def mymodel_forward(x, params):
    """x: (B, 251) float32 -> (B, 2) float32."""
    w1, b1, w2, b2, w3, b3 = params
    B = x.shape[0]

    tile_b = _choose_tile_b(B)
    grid = (pl.cdiv(B, tile_b),)

    # Weights are tiny -> pre-cast to bf16 for single-pass MXU matmuls. Biases stay f32.
    w1b = w1.astype(jnp.bfloat16)
    w2b = w2.astype(jnp.bfloat16)
    w3b = w3.astype(jnp.bfloat16)

    # Weights/biases: full-array blocks with a constant index_map -> resident in VMEM.
    def resident(arr):
        zeros = (0,) * arr.ndim
        return pl.BlockSpec(arr.shape, lambda i, _z=zeros: _z)

    out = pl.pallas_call(
        mlp_kernel,
        out_shape=jax.ShapeDtypeStruct((B, 2), jnp.float32),
        grid=grid,
        in_specs=[
            # x tiled over batch only; K dim read at its full logical width 251
            # (no jnp.pad copy, no 256-wide block).
            pl.BlockSpec((tile_b, IN_FEATURES), lambda i: (i, 0)),
            resident(w1b), resident(b1),
            resident(w2b), resident(b2),
            resident(w3b), resident(b3),
        ],
        out_specs=pl.BlockSpec((tile_b, 2), lambda i: (i, 0)),
        compiler_params=pltpu.CompilerParams(
            dimension_semantics=("parallel",),        # megacore shard on v7x
            vmem_limit_bytes=VMEM_LIMIT_BYTES,
        ),
    )(x, w1b, b1, w2b, b2, w3b, b3)

    return out


def init_params(key):
    """Deterministic init mirroring nn.Linear's U(-1/sqrt(fan_in), 1/sqrt(fan_in)).

    Weights stored transposed vs. PyTorch: (in_features, out_features).
    Biases stored as (1, out_features) for TPU-friendly 2D layout.
    """
    dims = [(251, 64), (64, 16), (16, 2)]
    params = []
    for (fan_in, fan_out) in dims:
        key, kw, kb = jax.random.split(key, 3)
        bound = 1.0 / np.sqrt(fan_in)
        w = jax.random.uniform(kw, (fan_in, fan_out), jnp.float32, -bound, bound)
        b = jax.random.uniform(kb, (1, fan_out), jnp.float32, -bound, bound)
        params += [w, b]
    return tuple(params)


def reference_forward(x, params):
    w1, b1, w2, b2, w3, b3 = params
    h1 = x @ w1 + b1
    h1 = jnp.where(h1 > 0, h1, NEG_SLOPE * h1)
    h2 = h1 @ w2 + b2
    h2 = jnp.where(h2 > 0, h2, NEG_SLOPE * h2)
    return h2 @ w3 + b3


if __name__ == "__main__":
    key = jax.random.PRNGKey(0)
    kx, kx2, kp = jax.random.split(key, 3)
    params = init_params(kp)

    # Small case (single full block).
    B = 8
    x = jax.random.normal(kx, (B, 251), dtype=jnp.float32)
    out = jax.block_until_ready(mymodel_forward(x, params))
    ref = reference_forward(x, params)
    np.testing.assert_allclose(np.asarray(out), np.asarray(ref), rtol=3e-2, atol=3e-2)
    assert out.shape == (B, 2) and out.dtype == jnp.float32

    # Multi-step grid with a partial (masked) last batch block and no padding.
    B2 = 300
    x2 = jax.random.normal(kx2, (B2, 251), dtype=jnp.float32)
    out2 = jax.block_until_ready(mymodel_forward(x2, params))
    ref2 = reference_forward(x2, params)
    np.testing.assert_allclose(np.asarray(out2), np.asarray(ref2), rtol=3e-2, atol=3e-2)
    assert out2.shape == (B2, 2) and out2.dtype == jnp.float32

    print("KERNEL_OK")
</pallas_src>

<mosaic_0001>
module attributes {stable_mosaic.version = 11 : i64} {
  func.func @mlp_kernel(%arg0: i32, %arg1: memref<8x251xf32, #tpu.memory_space<vmem>>, %arg2: memref<251x64xbf16, #tpu.memory_space<vmem>>, %arg3: memref<1x64xf32, #tpu.memory_space<vmem>>, %arg4: memref<64x16xbf16, #tpu.memory_space<vmem>>, %arg5: memref<1x16xf32, #tpu.memory_space<vmem>>, %arg6: memref<16x2xbf16, #tpu.memory_space<vmem>>, %arg7: memref<1x2xf32, #tpu.memory_space<vmem>>, %arg8: memref<8x2xf32, #tpu.memory_space<vmem>>) attributes {dimension_semantics = [#tpu.dimension_semantics<parallel>], iteration_bounds = array<i64: 1>, scalar_prefetch = 0 : i64, scratch_operands = 0 : i64, tpu.core_type = #tpu.core_type<tc>, window_params = [{transform_indices = @transform_0, window_bounds = array<i64: 8, 251>}, {pipeline_mode = #tpu.pipeline_mode<synchronous>, transform_indices = @transform_1, window_bounds = array<i64: 251, 64>}, {pipeline_mode = #tpu.pipeline_mode<synchronous>, transform_indices = @transform_2, window_bounds = array<i64: 1, 64>}, {pipeline_mode = #tpu.pipeline_mode<synchronous>, transform_indices = @transform_3, window_bounds = array<i64: 64, 16>}, {pipeline_mode = #tpu.pipeline_mode<synchronous>, transform_indices = @transform_4, window_bounds = array<i64: 1, 16>}, {pipeline_mode = #tpu.pipeline_mode<synchronous>, transform_indices = @transform_5, window_bounds = array<i64: 16, 2>}, {pipeline_mode = #tpu.pipeline_mode<synchronous>, transform_indices = @transform_6, window_bounds = array<i64: 1, 2>}, {transform_indices = @transform_7, window_bounds = array<i64: 8, 2>}]} {
    %c0 = arith.constant 0 : index
    %c0_0 = arith.constant 0 : index
    %0 = vector.load %arg1[%c0, %c0_0] : memref<8x251xf32, #tpu.memory_space<vmem>>, vector<8x251xf32>
    %1 = arith.truncf %0 : vector<8x251xf32> to vector<8x251xbf16>
    %c0_1 = arith.constant 0 : index
    %c0_2 = arith.constant 0 : index
    %2 = vector.load %arg2[%c0_1, %c0_2] : memref<251x64xbf16, #tpu.memory_space<vmem>>, vector<251x64xbf16>
    %cst = arith.constant dense<0.000000e+00> : vector<8x64xf32>
    %3 = tpu.matmul %1, %2, %cst {dimension_numbers = #tpu.dot_dimension_numbers<[1], [0], [0], [1], [0, 0, 1, 1], [], []>} : vector<8x251xbf16>, vector<251x64xbf16>, vector<8x64xf32> -> vector<8x64xf32>
    %c0_3 = arith.constant 0 : index
    %c0_4 = arith.constant 0 : index
    %4 = vector.load %arg3[%c0_3, %c0_4] : memref<1x64xf32, #tpu.memory_space<vmem>>, vector<1x64xf32>
    %5 = vector.broadcast %4 : vector<1x64xf32> to vector<8x64xf32>
    %6 = arith.addf %3, %5 : vector<8x64xf32>
    %cst_5 = arith.constant 0.000000e+00 : f32
    %7 = vector.broadcast %cst_5 : f32 to vector<8x64xf32>
    %8 = arith.cmpf ogt, %6, %7 : vector<8x64xf32>
    %cst_6 = arith.constant 0.00999999977 : f32
    %9 = vector.broadcast %cst_6 : f32 to vector<8x64xf32>
    %10 = arith.mulf %9, %6 : vector<8x64xf32>
    %11 = arith.select %8, %6, %10 : vector<8x64xi1>, vector<8x64xf32>
    %12 = arith.truncf %11 : vector<8x64xf32> to vector<8x64xbf16>
    %c0_7 = arith.constant 0 : index
    %c0_8 = arith.constant 0 : index
    %13 = vector.load %arg4[%c0_7, %c0_8] : memref<64x16xbf16, #tpu.memory_space<vmem>>, vector<64x16xbf16>
    %cst_9 = arith.constant dense<0.000000e+00> : vector<8x16xf32>
    %14 = tpu.matmul %12, %13, %cst_9 {dimension_numbers = #tpu.dot_dimension_numbers<[1], [0], [0], [1], [0, 0, 1, 1], [], []>} : vector<8x64xbf16>, vector<64x16xbf16>, vector<8x16xf32> -> vector<8x16xf32>
    %c0_10 = arith.constant 0 : index
    %c0_11 = arith.constant 0 : index
    %15 = vector.load %arg5[%c0_10, %c0_11] : memref<1x16xf32, #tpu.memory_space<vmem>>, vector<1x16xf32>
    %16 = vector.broadcast %15 : vector<1x16xf32> to vector<8x16xf32>
    %17 = arith.addf %14, %16 : vector<8x16xf32>
    %cst_12 = arith.constant 0.000000e+00 : f32
    %18 = vector.broadcast %cst_12 : f32 to vector<8x16xf32>
    %19 = arith.cmpf ogt, %17, %18 : vector<8x16xf32>
    %cst_13 = arith.constant 0.00999999977 : f32
    %20 = vector.broadcast %cst_13 : f32 to vector<8x16xf32>
    %21 = arith.mulf %20, %17 : vector<8x16xf32>
    %22 = arith.select %19, %17, %21 : vector<8x16xi1>, vector<8x16xf32>
    %23 = arith.truncf %22 : vector<8x16xf32> to vector<8x16xbf16>
    %c0_14 = arith.constant 0 : index
    %c0_15 = arith.constant 0 : index
    %24 = vector.load %arg6[%c0_14, %c0_15] : memref<16x2xbf16, #tpu.memory_space<vmem>>, vector<16x2xbf16>
    %cst_16 = arith.constant dense<0.000000e+00> : vector<8x2xf32>
    %25 = tpu.matmul %23, %24, %cst_16 {dimension_numbers = #tpu.dot_dimension_numbers<[1], [0], [0], [1], [0, 0, 1, 1], [], []>} : vector<8x16xbf16>, vector<16x2xbf16>, vector<8x2xf32> -> vector<8x2xf32>
    %c0_17 = arith.constant 0 : index
    %c0_18 = arith.constant 0 : index
    %26 = vector.load %arg7[%c0_17, %c0_18] : memref<1x2xf32, #tpu.memory_space<vmem>>, vector<1x2xf32>
    %27 = vector.broadcast %26 : vector<1x2xf32> to vector<8x2xf32>
    %28 = arith.addf %25, %27 : vector<8x2xf32>
    %c0_19 = arith.constant 0 : index
    %c0_20 = arith.constant 0 : index
    %29 = vector.load %arg8[%c0_19, %c0_20] : memref<8x2xf32, #tpu.memory_space<vmem>>, vector<8x2xf32>
    tpu.vector_store %arg8[%c0_19, %c0_20], %28 {strides = array<i32>} : memref<8x2xf32, #tpu.memory_space<vmem>>, vector<8x2xf32>,
    return
  }
  func.func @transform_0(%arg0: i32) -> (i32, i32) {
    %c0_i32 = arith.constant 0 : i32
    %c0_i32_0 = arith.constant 0 : i32
    return %arg0, %c0_i32 : i32, i32
  }
  func.func @transform_1(%arg0: i32) -> (i32, i32) {
    %c0_i32 = arith.constant 0 : i32
    %c0_i32_0 = arith.constant 0 : i32
    %c0_i32_1 = arith.constant 0 : i32
    return %c0_i32, %c0_i32_0 : i32, i32
  }
  func.func @transform_2(%arg0: i32) -> (i32, i32) {
    %c0_i32 = arith.constant 0 : i32
    %c0_i32_0 = arith.constant 0 : i32
    %c0_i32_1 = arith.constant 0 : i32
    return %c0_i32, %c0_i32_0 : i32, i32
  }
  func.func @transform_3(%arg0: i32) -> (i32, i32) {
    %c0_i32 = arith.constant 0 : i32
    %c0_i32_0 = arith.constant 0 : i32
    %c0_i32_1 = arith.constant 0 : i32
    return %c0_i32, %c0_i32_0 : i32, i32
  }
  func.func @transform_4(%arg0: i32) -> (i32, i32) {
    %c0_i32 = arith.constant 0 : i32
    %c0_i32_0 = arith.constant 0 : i32
    %c0_i32_1 = arith.constant 0 : i32
    return %c0_i32, %c0_i32_0 : i32, i32
  }
  func.func @transform_5(%arg0: i32) -> (i32, i32) {
    %c0_i32 = arith.constant 0 : i32
    %c0_i32_0 = arith.constant 0 : i32
    %c0_i32_1 = arith.constant 0 : i32
    return %c0_i32, %c0_i32_0 : i32, i32
  }
  func.func @transform_6(%arg0: i32) -> (i32, i32) {
    %c0_i32 = arith.constant 0 : i32
    %c0_i32_0 = arith.constant 0 : i32
    %c0_i32_1 = arith.constant 0 : i32
    return %c0_i32, %c0_i32_0 : i32, i32
  }
  func.func @transform_7(%arg0: i32) -> (i32, i32) {
    %c0_i32 = arith.constant 0 : i32
    %c0_i32_0 = arith.constant 0 : i32
    return %arg0, %c0_i32 : i32, i32
  }
}

</mosaic_0001>

<bundles_post_ra>
// kernel: mymodel_forward.1
= control target key start
LH: loop header
LB: loop body
LE: loop exit
PB: predicated region body
PF: predicated region fallthrough
CT: control target
= control target key end

     0   :  { %v470_v4 = vmov 0.0   ;;  %vm169_vm0 = vcmask 1044480   ;;  %vm170_vm1 = vcmask 1045504   ;;  %vm165_vm2 = vcmask 1006592   ;;  %s603_s1 = inlined_call_operand.vmem [shape: bf16[251,64], index: 1, kind: input, shape index: {}]   ;;  %s604_s0 = inlined_call_operand.vmem [shape: f32[8,251], index: 0, kind: input, shape index: {}]   ;;  %s605_s3 = inlined_call_operand.vmem [shape: bf16[64,16], index: 3, kind: input, shape index: {}]   ;;  %s606_s2 = inlined_call_operand.vmem [shape: f32[1,64], index: 2, kind: input, shape index: {}]   ;;  %s607_s5 = inlined_call_operand.vmem [shape: bf16[16,2], index: 5, kind: input, shape index: {}]   ;;  %s608_s4 = inlined_call_operand.vmem [shape: f32[1,16], index: 4, kind: input, shape index: {}]   ;;  %s609_s6 = inlined_call_operand.vmem [shape: f32[1,2], index: 6, kind: input, shape index: {}]   ;;  %s610_s7 = inlined_call_operand.vmem [shape: f32[8,2], index: 7, kind: output, shape index: {}]  }
   0x1   :  { %v449_v0 = vld [vmem:[%s603_s1 + $0x40] sm:$0xff]   ;;  %v451_v2 = vld [vmem:[%s603_s1 + $0x48] sm:$0xff]   ;;  %428 = vmatprep.subr.bf16.mxu1 %v470_v4  ;;  %v453_v5 = vld [vmem:[%s603_s1 + $0x50] sm:$0xff]   ;;  %v471_v13 = vmov 65535   ;;  %vm472_vm3 = vmmov 0   ;;  %vm259_vm5 = vcmask 523264  }
   0x2   :  { %v450_v1 = vld [vmem:[%s603_s1] sm:$0xff]   ;;  %399 = vmatprep.subr.bf16.mxu0 %v449_v0  ;;  %v452_v3 = vld [vmem:[%s603_s1 + $0x8] sm:$0xff]   ;;  %v454_v6 = vld [vmem:[%s603_s1 + $0x10] sm:$0xff]   ;;  %v171_v14 = vsel %vm169_vm0, 4294967295, %v471_v13  ;;  %436 = vmatprep.mubr.msk.bf16.mxu1 %vm472_vm3, %v470_v4  ;;  %vm322_vm7 = vcmask 130048   ;;  %vm366_vm8 = vcmask 15360  }
   0x3   :  { %400 = vmatpush3.bf16.msra.mxu0 %v450_v1  ;;  %v455_v7 = vld [vmem:[%s603_s1 + $0x58] sm:$0xff]   ;;  %v457_v9 = vld [vmem:[%s603_s1 + $0x60] sm:$0xff]   ;;  %v459_v11 = vld [vmem:[%s603_s1 + $0x68] sm:$0xff]   ;;  %v172_v20 = vsel %vm170_vm1, %v171_v14, 0 }
   0x4   :  { %401 = vmatprep.subr.bf16.mxu0 %v451_v2  ;;  %v456_v8 = vld [vmem:[%s603_s1 + $0x18] sm:$0xff]   ;;  %v458_v10 = vld [vmem:[%s603_s1 + $0x20] sm:$0xff]   ;;  %v28_v12 = vld [vmem:[%s604_s0 + $0x8] sm:$0xff] }
   0x5   :  { %v30_v15 = vpack.c.bf16 %v28_v12, %v28_v12  ;;  %v465_v16 = vld [vmem:[%s605_s3] sm:$0xff]   ;;  %v460_v17 = vld [vmem:[%s603_s1 + $0x28] sm:$0xff]   ;;  %v461_v18 = vld [vmem:[%s603_s1 + $0x70] sm:$0xff]  }
   0x6   :  { %v463_v19 = vld [vmem:[%s603_s1 + $0x78] sm:$0x3f]   ;;  %429 = vmatpush3.bf16.msra.mxu1 %v465_v16  ;;  %v462_v21 = vld [vmem:[%s603_s1 + $0x30] sm:$0xff]   ;;  %v27_v24 = vld [vmem:[%s604_s0] sm:$0xff] }
   0x7   :  { %402 = vmatpush3.bf16.msra.mxu0 %v452_v3  ;;  %389 = vmatprep.mubr.msk.bf16.mxu0 %vm165_vm2, %v30_v15  ;;  %v174_v22 = vand.u32 %v463_v19, %v172_v20  ;;  %v464_v23 = vld [vmem:[%s603_s1 + $0x38] sm:$0xff]   ;;  %v29_v25 = vpack.c.bf16 %v27_v24, %v27_v24  ;;  %v466_v26 = vld [vmem:[%s605_s3 + $0x8] sm:$0xff]   ;;  %v467_v27 = vld [vmem:[%s605_s3 + $0x10] sm:$0xff]  }
   0x8   :  { %403 = vmatprep.subr.bf16.mxu0 %v453_v5  ;;  %430 = vmatprep.subr.bf16.mxu1 %v470_v4  ;;  %v468_v28 = vld [vmem:[%s605_s3 + $0x18] sm:$0xff]   ;;  %v372_v30 = vld [vmem:[%s606_s2] ss:$0 sm:$0xff] }
   0x9   :  { %v469_v39 = vld [vmem:[%s607_s5] sm:$0xff]  }
   0xa   :  { %431 = vmatpush3.bf16.msra.mxu1 %v466_v26  ;;  %v390_v40 = vld [vmem:[%s608_s4] ss:$0 sm:$0xff] }
   0xb   :  { %404 = vmatpush3.bf16.msra.mxu0 %v454_v6  ;;  %432 = vmatprep.subr.bf16.mxu1 %v470_v4  ;;  %v396_v49 = vld [vmem:[%s609_s6] ss:$0 sm:$0xff] }
   0xc   :  { %405 = vmatprep.subr.bf16.mxu0 %v455_v7 }
   0xe   :  { %433 = vmatpush3.bf16.msra.mxu1 %v467_v27 }
   0xf   :  { %406 = vmatpush3.bf16.msra.mxu0 %v456_v8  ;;  %434 = vmatprep.subr.bf16.mxu1 %v470_v4 }
  0x10   :  { %407 = vmatprep.subr.bf16.mxu0 %v457_v9 }
  0x12   :  { %435 = vmatpush3.bf16.msra.mxu1 %v468_v28 }
  0x13   :  { %408 = vmatpush3.bf16.msra.mxu0 %v458_v10  ;;  %440 = vmatprep.subr.bf16.mxu1 %v470_v4 }
  0x14   :  { %409 = vmatprep.subr.bf16.mxu0 %v459_v11 }
  0x17   :  { %410 = vmatpush3.bf16.msra.mxu0 %v460_v17 }
  0x18   :  { %411 = vmatprep.subr.bf16.mxu0 %v461_v18 }
  0x1b   :  { %412 = vmatpush3.bf16.msra.mxu0 %v462_v21 }
  0x1c   :  { %413 = vmatprep.subr.bf16.mxu0 %v174_v22 }
  0x1f   :  { %414 = vmatpush3.bf16.msra.mxu0 %v464_v23 }
  0x22   :  { %209 = vmatmul.mubr.bf16.vlgmr.msra.gmra.mrb[0].mxu0 %v29_v25 }
  0xf5   :  { %v415_v29 = vpop.f32.mrb[0].mxu0 }
  0xf6   :  { %v416_v31 = vpop.f32.mrb[1].mxu0 }
  0xf7   :  { %v417_v32 = vadd.f32 %v416_v31, %v415_v29  ;;  %v418_v33 = vpop.f32.mrb[2].mxu0 }
  0xf8   :  { %v419_v34 = vpop.f32.mrb[3].mxu0 }
  0xf9   :  { %v211_v35 = vadd.f32 %v417_v32, %v372_v30 }
  0xfb   :  { %vm216_vm4 = vcmp.gt.f32.partialorder %v211_v35, 0.0  ;;  %v217_v36 = vmul.f32 0.01, %v211_v35 }
  0xfd   :  { %v218_v37 = vsel %vm216_vm4, %v211_v35, %v217_v36 }
  0xfe   :  { %v219_v38 = vpack.c.bf16 %v218_v37, %v218_v37 }
 0x100   :  { %437 = vmatmul.mubr.msk.bf16.vlgmr.msra.gmra.mrb[0].mxu1 %vm259_vm5, %v219_v38 }
 0x101   :  { %442 = vmatprep.mubr.msk.bf16.mxu1 %vm472_vm3, %v470_v4  ;;  %441 = vmatpush3.bf16.msra.mxu1 %v469_v39 }
 0x1d3   :  { %v297_v41 = vpop.f32.mrb[0].mxu1 }
 0x1d4   :  { %v298_v42 = vadd.f32 %v390_v40, %v297_v41  ;;  %v438_v43 = vpop.f32.mrb[1].mxu1 }
 0x1d5   :  { %v300_v44 = vpop.f32.mrb[2].mxu1 }
 0x1d6   :  { %vm303_vm6 = vcmp.gt.f32.partialorder %v298_v42, 0.0  ;;  %v304_v45 = vmul.f32 0.01, %v298_v42  ;;  %v439_v46 = vpop.f32.mrb[3].mxu1 }
 0x1d8   :  { %v305_v47 = vsel %vm303_vm6, %v298_v42, %v304_v45 }
 0x1d9   :  { %v306_v48 = vpack.c.bf16 %v305_v47, %v305_v47 }
 0x1db   :  { %443 = vmatmul.mubr.msk.bf16.vlgmr.msra.gmra.mrb[4].mxu1 %vm322_vm7, %v306_v48 }
 0x2ae   :  { %v360_v50 = vpop.f32.mrb[4].mxu1 }
 0x2af   :  { %v361_v51 = vadd.f32 %v396_v49, %v360_v50  ;;  %v444_v52 = vpop.f32.mrb[5].mxu1 }
 0x2b0   :  { %v363_v53 = vpop.f32.mrb[6].mxu1 }
 0x2b1   :  { %367 = vst.msk [vmem:[%s610_s7] sm:$0xff] %vm366_vm8, %v361_v51  ;;  %v445_v54 = vpop.f32.mrb[7].mxu1 }

</bundles_post_ra>
